<compile_context>
chip_gen: v7x
topology: tpu7x:2x2x1
jax: 0.10.0
libtpu: 0.0.40
codegen_flags: <defaults>
</compile_context>

<pallas_src>
import jax
import jax.numpy as jnp
from jax.experimental import pallas as pl
from jax.experimental.pallas import tpu as pltpu

LANES = 128  # lane-dense padded width for the final layer's output block


def _round_up(n, m):
    return ((n + m - 1) // m) * m


def mlp_kernel(x_ref, w1_ref, b1_ref, w2_ref, b2_ref, w3_ref, b3_ref, o_ref):
    # x tile arrives as f32 (single HBM pass); cast to bf16 in VMEM for the MXU.
    x_bf = x_ref[...].astype(jnp.bfloat16)                       # (TB, 3072)
    h1 = jnp.dot(x_bf, w1_ref[...], preferred_element_type=jnp.float32)
    h1 = jnp.maximum(h1 + b1_ref[...], 0.0)                      # (TB, 64) f32
    h2 = jnp.dot(h1.astype(jnp.bfloat16), w2_ref[...],
                 preferred_element_type=jnp.float32)
    h2 = jnp.maximum(h2 + b2_ref[...], 0.0)                      # (TB, 32) f32
    h3 = jnp.dot(h2.astype(jnp.bfloat16), w3_ref[...],
                 preferred_element_type=jnp.float32)
    # Lane-dense (TB, 128) f32 store; cols 10..127 are zero-padded garbage and
    # are sliced off by the wrapper.  (bf16 output would halve writeback bytes
    # if downstream tolerates it.)
    o_ref[...] = (h3 + b3_ref[...]).astype(o_ref.dtype)


def _choose_batch_tile(batch, block_b):
    """Pick a sublane-aligned batch tile; prefer an even grid-step count (v7x)."""
    if batch < 8:
        return batch  # block dim == full array dim, no masking needed
    tb = min(block_b, _round_up(batch, 8))
    steps = pl.cdiv(batch, tb)
    if steps > 1 and steps % 2 == 1:
        # Shrink the tile so the "parallel" axis splits evenly across 2 TCs.
        tb = _round_up(pl.cdiv(batch, steps + 1), 8)
    return tb


def mlp_forward(x_nchw, params, *, block_b=1024):
    """x_nchw: (B, 3, 32, 32) float32. Returns logits (B, 10) float32."""
    w1, b1, w2, b2, w3, b3 = params
    B = x_nchw.shape[0]

    # nn.Flatten: (B, C, H, W) -> (B, C*H*W), row-major -- plain JAX glue.
    x_flat = x_nchw.reshape(B, -1)          # stays f32: no extra cast/pad pass
    d_in = x_flat.shape[1]
    h1_d, h2_d, n_out = w1.shape[1], w2.shape[1], w3.shape[1]

    # Tiny resident weights -> bf16 for the MXU; biases stay f32.
    w1_b = w1.astype(jnp.bfloat16)
    w2_b = w2.astype(jnp.bfloat16)
    # Pad layer-3 output columns to 128 (zeros) so the output block is
    # lane-dense (unmasked vst); wrapper slices back to 10 logits.
    w3_p = jnp.zeros((h2_d, LANES), jnp.bfloat16).at[:, :n_out].set(
        w3.astype(jnp.bfloat16))
    b3_p = jnp.zeros((1, LANES), jnp.float32).at[:, :n_out].set(b3)

    tb = _choose_batch_tile(B, block_b)
    grid = (pl.cdiv(B, tb),)                # ragged last block masked by Mosaic

    resident = lambda i: (0, 0)             # weights/biases: same block each step

    flops = 2 * B * (d_in * h1_d + h1_d * h2_d + h2_d * LANES)
    bytes_accessed = (
        x_flat.size * 4
        + w1_b.size * 2 + b1.size * 4
        + w2_b.size * 2 + b2.size * 4
        + w3_p.size * 2 + b3_p.size * 4
        + B * LANES * 4
    )

    out = pl.pallas_call(
        mlp_kernel,
        out_shape=jax.ShapeDtypeStruct((B, LANES), jnp.float32),
        grid_spec=pltpu.PrefetchScalarGridSpec(
            num_scalar_prefetch=0,
            grid=grid,
            in_specs=[
                pl.BlockSpec((tb, d_in), lambda i: (i, 0)),   # streamed f32 x tile
                pl.BlockSpec(w1_b.shape, resident),           # resident weights
                pl.BlockSpec(b1.shape, resident),
                pl.BlockSpec(w2_b.shape, resident),
                pl.BlockSpec(b2.shape, resident),
                pl.BlockSpec(w3_p.shape, resident),
                pl.BlockSpec(b3_p.shape, resident),
            ],
            out_specs=pl.BlockSpec((tb, LANES), lambda i: (i, 0)),
        ),
        compiler_params=pltpu.CompilerParams(
            dimension_semantics=("parallel",),
            # 12 MiB/buffer f32 x tiles (double-buffered) + <1 MiB weights + out:
            # needs more than v5e's 16 MiB scoped default; 64 MiB is safe on
            # v5e/v6e (128 MiB physical) and v7x (64 MiB physical per TC).
            vmem_limit_bytes=64 << 20,
        ),
        cost_estimate=pl.CostEstimate(
            flops=flops, transcendentals=0, bytes_accessed=bytes_accessed
        ),
    )(x_flat, w1_b, b1, w2_b, b2, w3_p, b3_p)

    # TODO(synk): downstream ops could consume the padded (B, 128) block
    # directly and skip this slice pass.
    return out[:, :n_out]


def init_params(key):
    """Deterministic parameter init (same shapes as the torch module).

    Weights are stored as (in_features, out_features) = PyTorch weight.T.
    Biases are stored as (1, out_features) for TPU-friendly broadcasting.
    """
    k1, k2, k3, k4, k5, k6 = jax.random.split(key, 6)
    d_in, h1, h2, d_out = 32 * 32 * 3, 64, 32, 10

    def uniform(k, shape, fan_in):
        bound = 1.0 / jnp.sqrt(fan_in)
        return jax.random.uniform(k, shape, jnp.float32, -bound, bound)

    w1 = uniform(k1, (d_in, h1), d_in)
    b1 = uniform(k2, (1, h1), d_in)
    w2 = uniform(k3, (h1, h2), h1)
    b2 = uniform(k4, (1, h2), h1)
    w3 = uniform(k5, (h2, d_out), h2)
    b3 = uniform(k6, (1, d_out), h2)
    return (w1, b1, w2, b2, w3, b3)


def mlp_reference(x_nchw, params):
    """Pure-JAX f32 reference (module semantics) for correctness check."""
    w1, b1, w2, b2, w3, b3 = params
    x = x_nchw.reshape(x_nchw.shape[0], -1)
    h1 = jnp.maximum(x @ w1 + b1, 0.0)
    h2 = jnp.maximum(h1 @ w2 + b2, 0.0)
    return h2 @ w3 + b3


if __name__ == "__main__":
    key = jax.random.PRNGKey(0)
    k_x, k_p = jax.random.split(key)

    # CIFAR-like input implied by Linear(32*32*3, 64): (B, 3, 32, 32), NCHW.
    x = jax.random.normal(k_x, (2, 3, 32, 32), dtype=jnp.float32)
    params = init_params(k_p)

    out = mlp_forward(x, params)
    jax.block_until_ready(out)

    ref = mlp_reference(x, params)
    assert out.shape == (2, 10)
    # bf16 MXU inputs (x, weights, hidden activations) vs. a pure-f32 reference.
    assert jnp.allclose(out, ref, atol=2e-2, rtol=2e-2), (
        f"max abs err {jnp.max(jnp.abs(out - ref))}"
    )

    print("KERNEL_OK")
</pallas_src>

<mosaic_0001>
module attributes {stable_mosaic.version = 11 : i64} {
  func.func @mlp_kernel(%arg0: i32, %arg1: memref<2x3072xf32, #tpu.memory_space<vmem>>, %arg2: memref<3072x64xbf16, #tpu.memory_space<vmem>>, %arg3: memref<1x64xf32, #tpu.memory_space<vmem>>, %arg4: memref<64x32xbf16, #tpu.memory_space<vmem>>, %arg5: memref<1x32xf32, #tpu.memory_space<vmem>>, %arg6: memref<32x128xbf16, #tpu.memory_space<vmem>>, %arg7: memref<1x128xf32, #tpu.memory_space<vmem>>, %arg8: memref<2x128xf32, #tpu.memory_space<vmem>>) attributes {dimension_semantics = [#tpu.dimension_semantics<parallel>], iteration_bounds = array<i64: 1>, scalar_prefetch = 0 : i64, scratch_operands = 0 : i64, tpu.core_type = #tpu.core_type<tc>, window_params = [{transform_indices = @transform_0, window_bounds = array<i64: 2, 3072>}, {pipeline_mode = #tpu.pipeline_mode<synchronous>, transform_indices = @transform_1, window_bounds = array<i64: 3072, 64>}, {pipeline_mode = #tpu.pipeline_mode<synchronous>, transform_indices = @transform_2, window_bounds = array<i64: 1, 64>}, {pipeline_mode = #tpu.pipeline_mode<synchronous>, transform_indices = @transform_3, window_bounds = array<i64: 64, 32>}, {pipeline_mode = #tpu.pipeline_mode<synchronous>, transform_indices = @transform_4, window_bounds = array<i64: 1, 32>}, {pipeline_mode = #tpu.pipeline_mode<synchronous>, transform_indices = @transform_5, window_bounds = array<i64: 32, 128>}, {pipeline_mode = #tpu.pipeline_mode<synchronous>, transform_indices = @transform_6, window_bounds = array<i64: 1, 128>}, {transform_indices = @transform_7, window_bounds = array<i64: 2, 128>}]} {
    %c0 = arith.constant 0 : index
    %c0_0 = arith.constant 0 : index
    %0 = vector.load %arg1[%c0, %c0_0] : memref<2x3072xf32, #tpu.memory_space<vmem>>, vector<2x3072xf32>
    %1 = arith.truncf %0 : vector<2x3072xf32> to vector<2x3072xbf16>
    %c0_1 = arith.constant 0 : index
    %c0_2 = arith.constant 0 : index
    %2 = vector.load %arg2[%c0_1, %c0_2] : memref<3072x64xbf16, #tpu.memory_space<vmem>>, vector<3072x64xbf16>
    %cst = arith.constant dense<0.000000e+00> : vector<2x64xf32>
    %3 = tpu.matmul %1, %2, %cst {dimension_numbers = #tpu.dot_dimension_numbers<[1], [0], [0], [1], [0, 0, 1, 1], [], []>} : vector<2x3072xbf16>, vector<3072x64xbf16>, vector<2x64xf32> -> vector<2x64xf32>
    %c0_3 = arith.constant 0 : index
    %c0_4 = arith.constant 0 : index
    %4 = vector.load %arg3[%c0_3, %c0_4] : memref<1x64xf32, #tpu.memory_space<vmem>>, vector<1x64xf32>
    %5 = vector.broadcast %4 : vector<1x64xf32> to vector<2x64xf32>
    %6 = arith.addf %3, %5 : vector<2x64xf32>
    %cst_5 = arith.constant 0.000000e+00 : f32
    %7 = vector.broadcast %cst_5 : f32 to vector<2x64xf32>
    %8 = arith.maximumf %6, %7 : vector<2x64xf32>
    %9 = arith.truncf %8 : vector<2x64xf32> to vector<2x64xbf16>
    %c0_6 = arith.constant 0 : index
    %c0_7 = arith.constant 0 : index
    %10 = vector.load %arg4[%c0_6, %c0_7] : memref<64x32xbf16, #tpu.memory_space<vmem>>, vector<64x32xbf16>
    %cst_8 = arith.constant dense<0.000000e+00> : vector<2x32xf32>
    %11 = tpu.matmul %9, %10, %cst_8 {dimension_numbers = #tpu.dot_dimension_numbers<[1], [0], [0], [1], [0, 0, 1, 1], [], []>} : vector<2x64xbf16>, vector<64x32xbf16>, vector<2x32xf32> -> vector<2x32xf32>
    %c0_9 = arith.constant 0 : index
    %c0_10 = arith.constant 0 : index
    %12 = vector.load %arg5[%c0_9, %c0_10] : memref<1x32xf32, #tpu.memory_space<vmem>>, vector<1x32xf32>
    %13 = vector.broadcast %12 : vector<1x32xf32> to vector<2x32xf32>
    %14 = arith.addf %11, %13 : vector<2x32xf32>
    %cst_11 = arith.constant 0.000000e+00 : f32
    %15 = vector.broadcast %cst_11 : f32 to vector<2x32xf32>
    %16 = arith.maximumf %14, %15 : vector<2x32xf32>
    %17 = arith.truncf %16 : vector<2x32xf32> to vector<2x32xbf16>
    %c0_12 = arith.constant 0 : index
    %c0_13 = arith.constant 0 : index
    %18 = vector.load %arg6[%c0_12, %c0_13] : memref<32x128xbf16, #tpu.memory_space<vmem>>, vector<32x128xbf16>
    %cst_14 = arith.constant dense<0.000000e+00> : vector<2x128xf32>
    %19 = tpu.matmul %17, %18, %cst_14 {dimension_numbers = #tpu.dot_dimension_numbers<[1], [0], [0], [1], [0, 0, 1, 1], [], []>} : vector<2x32xbf16>, vector<32x128xbf16>, vector<2x128xf32> -> vector<2x128xf32>
    %c0_15 = arith.constant 0 : index
    %c0_16 = arith.constant 0 : index
    %20 = vector.load %arg7[%c0_15, %c0_16] : memref<1x128xf32, #tpu.memory_space<vmem>>, vector<1x128xf32>
    %21 = vector.broadcast %20 : vector<1x128xf32> to vector<2x128xf32>
    %22 = arith.addf %19, %21 : vector<2x128xf32>
    %c0_17 = arith.constant 0 : index
    %c0_18 = arith.constant 0 : index
    %23 = vector.load %arg8[%c0_17, %c0_18] : memref<2x128xf32, #tpu.memory_space<vmem>>, vector<2x128xf32>
    tpu.vector_store %arg8[%c0_17, %c0_18], %22 {strides = array<i32>} : memref<2x128xf32, #tpu.memory_space<vmem>>, vector<2x128xf32>,
    return
  }
  func.func @transform_0(%arg0: i32) -> (i32, i32) {
    %c0_i32 = arith.constant 0 : i32
    %c0_i32_0 = arith.constant 0 : i32
    return %arg0, %c0_i32 : i32, i32
  }
  func.func @transform_1(%arg0: i32) -> (i32, i32) {
    %c0_i32 = arith.constant 0 : i32
    %c0_i32_0 = arith.constant 0 : i32
    %c0_i32_1 = arith.constant 0 : i32
    return %c0_i32, %c0_i32_0 : i32, i32
  }
  func.func @transform_2(%arg0: i32) -> (i32, i32) {
    %c0_i32 = arith.constant 0 : i32
    %c0_i32_0 = arith.constant 0 : i32
    %c0_i32_1 = arith.constant 0 : i32
    return %c0_i32, %c0_i32_0 : i32, i32
  }
  func.func @transform_3(%arg0: i32) -> (i32, i32) {
    %c0_i32 = arith.constant 0 : i32
    %c0_i32_0 = arith.constant 0 : i32
    %c0_i32_1 = arith.constant 0 : i32
    return %c0_i32, %c0_i32_0 : i32, i32
  }
  func.func @transform_4(%arg0: i32) -> (i32, i32) {
    %c0_i32 = arith.constant 0 : i32
    %c0_i32_0 = arith.constant 0 : i32
    %c0_i32_1 = arith.constant 0 : i32
    return %c0_i32, %c0_i32_0 : i32, i32
  }
  func.func @transform_5(%arg0: i32) -> (i32, i32) {
    %c0_i32 = arith.constant 0 : i32
    %c0_i32_0 = arith.constant 0 : i32
    %c0_i32_1 = arith.constant 0 : i32
    return %c0_i32, %c0_i32_0 : i32, i32
  }
  func.func @transform_6(%arg0: i32) -> (i32, i32) {
    %c0_i32 = arith.constant 0 : i32
    %c0_i32_0 = arith.constant 0 : i32
    %c0_i32_1 = arith.constant 0 : i32
    return %c0_i32, %c0_i32_0 : i32, i32
  }
  func.func @transform_7(%arg0: i32) -> (i32, i32) {
    %c0_i32 = arith.constant 0 : i32
    %c0_i32_0 = arith.constant 0 : i32
    return %arg0, %c0_i32 : i32, i32
  }
}

</mosaic_0001>

<bundles_post_ra>
// kernel: tpu_custom_call.1
= control target key start
LH: loop header
LB: loop body
LE: loop exit
PB: predicated region body
PF: predicated region fallthrough
CT: control target
= control target key end

     0   :  { %12 = vsyncpa [#allocation3], 0  ;;  %s3543_s0 = inlined_call_operand.hbm [shape: f32[2,3072], index: 0, kind: input, shape index: {}]   ;;  %s3544_s1 = inlined_call_operand.hbm [shape: bf16[3072,64], index: 1, kind: input, shape index: {}]   ;;  %s3545_s2 = inlined_call_operand.hbm [shape: f32[1,64], index: 2, kind: input, shape index: {}]   ;;  %s3546_s3 = inlined_call_operand.hbm [shape: bf16[64,32], index: 3, kind: input, shape index: {}]   ;;  %s3547_s4 = inlined_call_operand.hbm [shape: f32[1,32], index: 4, kind: input, shape index: {}]   ;;  %s3548_s5 = inlined_call_operand.hbm [shape: bf16[32,128], index: 5, kind: input, shape index: {}]   ;;  %s3549_s6 = inlined_call_operand.hbm [shape: f32[1,128], index: 6, kind: input, shape index: {}]   ;;  %s3550_s7 = inlined_call_operand.hbm [shape: f32[2,128], index: 7, kind: output, shape index: {}]  }
   0x1   :  { %13 = vsyncpa [#allocation6], 0 }
   0x2   :  { %14 = vsyncpa [#allocation9], 0 }
   0x3   :  { %15 = vsyncpa [#allocation12], 0 }
   0x4   :  { %16 = vsyncpa [#allocation4], 0  ;;  %s3371_s24 = smov [#allocation5]   ;;  %s3185_s28 = scalar_lea.hbm %s3544_s1, 24576 }
   0x5   :  { %s32_s25 = sshll.u32 %s3371_s24, 4  ;;  %p3186_p0 = scmp.ne.s32.totalorder %s3544_s1, %s3185_s28  ;;  %s33_s25 = int_to_ptr.vmem [resolvable:$true] %s32_s25 }
   0x6   :  { %p3189_p1 = scmp.lt.u32.totalorder %s3185_s28, %s3544_s1 }
   0x8   :  { %p3191_p2 = pnand %p3189_p1, %p3186_p0 }
   0xa   :  { %3194 = shalt.err (!%p3191_p2)
}
   0xb   :  { %s3195_s10 = scalar_lea.vmem %s33_s25, 24576  ;;  %p3200_p4 = scmp.lt.s32.totalorder %s33_s25, %s33_s25 }
   0xc   :  { %p3196_p3 = scmp.ne.s32.totalorder %s33_s25, %s3195_s10  ;;  %p3201_p5 = scmp.lt.s32.totalorder %s3195_s10, %s3195_s10 }
   0xe   :  { %p3202_p6 = por %p3201_p5, %p3200_p4 }
  0x10   :  { %p3203_p7 = pnand %p3202_p6, %p3196_p3 }
  0x12   :  { %3206 = shalt.err (!%p3203_p7)
}
  0x13   :  { %s3372_s11 = smov 64   ;;  %s3373_s12 = smov 4  }
  0x14   :  { %38 = dma.hbm_to_vmem [thread:$0]  %s3544_s1, 24576, %s33_s25, [#allocation6], %s3372_s11, %s3372_s11, %s3373_s12  }
  0x15   :  { %s3374_s15 = smov [#allocation8]   ;;  %s3375_s17 = smov [#allocation11]  }
  0x16   :  { %s54_s16 = sshll.u32 %s3374_s15, 4  ;;  %s76_s18 = sshll.u32 %s3375_s17, 4  ;;  %s55_s16 = int_to_ptr.vmem [resolvable:$true] %s54_s16  ;;  %s77_s18 = int_to_ptr.vmem [resolvable:$true] %s76_s18 }
  0x17   :  { %s3207_s21 = scalar_lea.hbm %s3546_s3, 512 }
  0x18   :  { %p3208_p8 = scmp.ne.s32.totalorder %s3546_s3, %s3207_s21  ;;  %p3211_p9 = scmp.lt.u32.totalorder %s3207_s21, %s3546_s3 }
  0x1a   :  { %p3213_p10 = pnand %p3211_p9, %p3208_p8 }
  0x1c   :  { %3216 = shalt.err (!%p3213_p10)
}
  0x1d   :  { %s3217_s1 = scalar_lea.vmem %s55_s16, 512  ;;  %p3222_p12 = scmp.lt.s32.totalorder %s55_s16, %s55_s16 }
  0x1e   :  { %p3218_p11 = scmp.ne.s32.totalorder %s55_s16, %s3217_s1  ;;  %p3223_p13 = scmp.lt.s32.totalorder %s3217_s1, %s3217_s1 }
  0x20   :  { %p3224_p0 = por %p3223_p13, %p3222_p12 }
  0x22   :  { %p3225_p1 = pnand %p3224_p0, %p3218_p11 }
  0x24   :  { %3228 = shalt.err (!%p3225_p1)
}
  0x25   :  { %60 = dma.hbm_to_vmem [thread:$0]  %s3546_s3, 512, %s55_s16, [#allocation9], %s3372_s11, %s3372_s11, %s3373_s12  }
  0x26   :  { %s3229_s30 = scalar_lea.hbm %s3548_s5, 256 }
  0x27   :  { %p3230_p2 = scmp.ne.s32.totalorder %s3548_s5, %s3229_s30  ;;  %p3233_p3 = scmp.lt.u32.totalorder %s3229_s30, %s3548_s5 }
  0x29   :  { %p3235_p4 = pnand %p3233_p3, %p3230_p2 }
  0x2b   :  { %3238 = shalt.err (!%p3235_p4)
}
  0x2c   :  { %s3239_s14 = scalar_lea.vmem %s77_s18, 256  ;;  %p3244_p6 = scmp.lt.s32.totalorder %s77_s18, %s77_s18 }
  0x2d   :  { %p3240_p5 = scmp.ne.s32.totalorder %s77_s18, %s3239_s14  ;;  %p3245_p7 = scmp.lt.s32.totalorder %s3239_s14, %s3239_s14 }
  0x2f   :  { %p3246_p8 = por %p3245_p7, %p3244_p6 }
  0x31   :  { %p3247_p9 = pnand %p3246_p8, %p3240_p5 }
  0x33   :  { %3250 = shalt.err (!%p3247_p9)
}
  0x34   :  { %82 = dma.hbm_to_vmem [thread:$0]  %s3548_s5, 256, %s77_s18, [#allocation12], %s3372_s11, %s3372_s11, %s3373_s12  }
  0x35   :  { %s3376_s16 = smov [#allocation2]   ;;  %s3377_s19 = smov [#allocation7]  }
  0x36   :  { %s23_s17 = sshll.u32 %s3376_s16, 4  ;;  %s45_s20 = sshll.u32 %s3377_s19, 4  ;;  %s24_s17 = int_to_ptr.vmem [resolvable:$true] %s23_s17  ;;  %s46_s20 = int_to_ptr.vmem [resolvable:$true] %s45_s20 }
  0x37   :  { %s3251_s23 = scalar_lea.hbm %s3543_s0, 768 }
  0x38   :  { %p3252_p10 = scmp.ne.s32.totalorder %s3543_s0, %s3251_s23  ;;  %p3255_p11 = scmp.lt.u32.totalorder %s3251_s23, %s3543_s0 }
  0x3a   :  { %p3257_p12 = pnand %p3255_p11, %p3252_p10 }
  0x3c   :  { %3260 = shalt.err (!%p3257_p12)
}
  0x3d   :  { %s3261_s5 = scalar_lea.vmem %s24_s17, 768  ;;  %p3266_p0 = scmp.lt.s32.totalorder %s24_s17, %s24_s17 }
  0x3e   :  { %p3262_p13 = scmp.ne.s32.totalorder %s24_s17, %s3261_s5  ;;  %p3267_p1 = scmp.lt.s32.totalorder %s3261_s5, %s3261_s5 }
  0x40   :  { %p3268_p2 = por %p3267_p1, %p3266_p0 }
  0x42   :  { %p3269_p3 = pnand %p3268_p2, %p3262_p13 }
  0x44   :  { %3272 = shalt.err (!%p3269_p3)
}
  0x45   :  { %26 = dma.hbm_to_vmem [thread:$0]  %s3543_s0, 768, %s24_s17, [#allocation3]  }
  0x46   :  { %s3273_s28 = scalar_lea.hbm %s3545_s2, 16 }
  0x47   :  { %p3274_p4 = scmp.ne.s32.totalorder %s3545_s2, %s3273_s28  ;;  %p3277_p5 = scmp.lt.u32.totalorder %s3273_s28, %s3545_s2 }
  0x49   :  { %p3279_p6 = pnand %p3277_p5, %p3274_p4 }
  0x4b   :  { %3282 = shalt.err (!%p3279_p6)
}
  0x4c   :  { %s3283_s10 = scalar_lea.vmem %s46_s20, 16  ;;  %s3287_s13 = scalar_lea.vmem %s46_s20, 32 }
  0x4d   :  { %p3284_p7 = scmp.ne.s32.totalorder %s46_s20, %s3283_s10  ;;  %p3288_p8 = scmp.lt.s32.totalorder %s46_s20, %s46_s20 }
  0x4e   :  { %p3289_p9 = scmp.lt.s32.totalorder %s3287_s13, %s3283_s10 }
  0x50   :  { %p3290_p10 = por %p3289_p9, %p3288_p8 }
  0x52   :  { %p3291_p11 = pnand %p3290_p10, %p3284_p7 }
  0x54   :  { %3294 = shalt.err (!%p3291_p11)
}
  0x55   :  { %48 = dma.hbm_to_vmem [thread:$0]  %s3545_s2, 16, %s46_s20, [#allocation6]  }
  0x56   :  { %s3378_s3 = smov [#allocation10]   ;;  %s3379_s16 = smov [#allocation13]  }
  0x57   :  { %s67_s15 = sshll.u32 %s3378_s3, 4  ;;  %s89_s17 = sshll.u32 %s3379_s16, 4  ;;  %s68_s15 = int_to_ptr.vmem [resolvable:$true] %s67_s15  ;;  %s90_s17 = int_to_ptr.vmem [resolvable:$true] %s89_s17 }
  0x58   :  { %s3295_s22 = scalar_lea.hbm %s3547_s4, 16 }
  0x59   :  { %p3296_p12 = scmp.ne.s32.totalorder %s3547_s4, %s3295_s22  ;;  %p3299_p13 = scmp.lt.u32.totalorder %s3295_s22, %s3547_s4 }
  0x5b   :  { %p3301_p0 = pnand %p3299_p13, %p3296_p12 }
  0x5d   :  { %3304 = shalt.err (!%p3301_p0)
}
  0x5e   :  { %s3305_s2 = scalar_lea.vmem %s68_s15, 16  ;;  %s3309_s20 = scalar_lea.vmem %s68_s15, 32 }
  0x5f   :  { %p3306_p1 = scmp.ne.s32.totalorder %s68_s15, %s3305_s2  ;;  %p3310_p2 = scmp.lt.s32.totalorder %s68_s15, %s68_s15 }
  0x60   :  { %p3311_p3 = scmp.lt.s32.totalorder %s3309_s20, %s3305_s2 }
  0x62   :  { %p3312_p4 = por %p3311_p3, %p3310_p2 }
  0x64   :  { %p3313_p5 = pnand %p3312_p4, %p3306_p1 }
  0x66   :  { %3316 = shalt.err (!%p3313_p5)
}
  0x67   :  { %70 = dma.hbm_to_vmem [thread:$0]  %s3547_s4, 16, %s68_s15, [#allocation9]  }
  0x68   :  { %s3317_s18 = scalar_lea.hbm %s3549_s6, 16 }
  0x69   :  { %p3318_p6 = scmp.ne.s32.totalorder %s3549_s6, %s3317_s18  ;;  %p3321_p7 = scmp.lt.u32.totalorder %s3317_s18, %s3549_s6 }
  0x6b   :  { %p3323_p8 = pnand %p3321_p7, %p3318_p6 }
  0x6d   :  { %3326 = shalt.err (!%p3323_p8)
}
  0x6e   :  { %s3327_s8 = scalar_lea.vmem %s90_s17, 16  ;;  %s3331_s9 = scalar_lea.vmem %s90_s17, 32 }
  0x6f   :  { %p3328_p9 = scmp.ne.s32.totalorder %s90_s17, %s3327_s8  ;;  %p3332_p10 = scmp.lt.s32.totalorder %s90_s17, %s90_s17 }
  0x70   :  { %p3333_p11 = scmp.lt.s32.totalorder %s3331_s9, %s3327_s8 }
  0x72   :  { %p3334_p12 = por %p3333_p11, %p3332_p10 }
  0x74   :  { %p3335_p13 = pnand %p3334_p12, %p3328_p9 }
  0x76   :  { %3338 = shalt.err (!%p3335_p13)
}
  0x77   :  { %92 = dma.hbm_to_vmem [thread:$0]  %s3549_s6, 16, %s90_s17, [#allocation12]  }
  0x78   :  { %3361 = dma.done.wait [#allocation3], 768  }
  0x79   :  { %3362 = vsyncadd [#allocation3], 4294966528 }
  0x7a   :  { %3363 = dma.done.wait [#allocation6], 24592  }
  0x7b   :  { %3364 = vsyncadd [#allocation6], 4294942704 }
  0x7c   :  { %3365 = dma.done.wait [#allocation9], 528  }
  0x7d   :  { %3366 = vsyncadd [#allocation9], 4294966768 }
  0x7e   :  { %3367 = dma.done.wait [#allocation12], 272  }
  0x7f   :  { %3368 = vsyncadd [#allocation12], 4294967024  ;;  %v2981_v0 = vld [vmem:[#allocation5 + $0x40] sm:$0xff]   ;;  %v2985_v4 = vld [vmem:[#allocation5 + $0x48] sm:$0xff]   ;;  %v3380_v22 = vmov 1983009808   ;;  %v131_v24 = vlaneseq }
  0x80   :  { %v2982_v1 = vld [vmem:[#allocation5 + $0xc0] sm:$0xff]   ;;  %2676 = vmatprep.subr.bf16.mxu0 %v2981_v0  ;;  %v2986_v5 = vld [vmem:[#allocation5 + $0xc8] sm:$0xff]   ;;  %v2989_v8 = vld [vmem:[#allocation5 + $0x50] sm:$0xff]   ;;  %v129_v23 = vunpack.c.l.s4 %v3380_v22  ;;  %vm3382_vm0 = vmmov 0   ;;  %vm2341_vm1 = vcmask 523264   ;;  %vm2410_vm2 = vcmask 261120  }
  0x81   :  { %v2983_v2 = vld [vmem:[#allocation5] sm:$0xff]   ;;  %2698 = vmatprep.subr.bf16.mxu1 %v2982_v1  ;;  %v2987_v6 = vld [vmem:[#allocation5 + $0x8] sm:$0xff]   ;;  %v2990_v9 = vld [vmem:[#allocation5 + $0xd0] sm:$0xff]   ;;  %v132_v30 = vshrl.u32 %v131_v24, 7  ;;  %s3383_s6 = smov [#allocation14]  }
  0x82   :  { %v2984_v3 = vld [vmem:[#allocation5 + $0x80] sm:$0xff]   ;;  %2677 = vmatpush3.bf16.msra.mxu0 %v2983_v2  ;;  %v2988_v7 = vld [vmem:[#allocation5 + $0x88] sm:$0xff]   ;;  %v2991_v10 = vld [vmem:[#allocation5 + $0x10] sm:$0xff]   ;;  %v130_v29 = vunpack.c.0.s8 %v129_v23  ;;  %s2461_s13 = sshll.u32 %s3383_s6, 4  ;;  %s2462_s13 = int_to_ptr.vmem [resolvable:$true] %s2461_s13 }
  0x83   :  { %2699 = vmatpush3.bf16.msra.mxu1 %v2984_v3  ;;  %2678 = vmatprep.subr.bf16.mxu0 %v2985_v4  ;;  %v2992_v11 = vld [vmem:[#allocation5 + $0x90] sm:$0xff]   ;;  %v2993_v12 = vld [vmem:[#allocation5 + $0x58] sm:$0xff]   ;;  %v2997_v16 = vld [vmem:[#allocation5 + $0x60] sm:$0xff]   ;;  %s3339_s0 = scalar_lea.vmem %s2462_s13, 32  ;;  %p3344_p1 = scmp.lt.s32.totalorder %s2462_s13, %s2462_s13 }
  0x84   :  { %2700 = vmatprep.subr.bf16.mxu1 %v2986_v5  ;;  %v2994_v13 = vld [vmem:[#allocation5 + $0xd8] sm:$0xff]   ;;  %v2998_v17 = vld [vmem:[#allocation5 + $0xe0] sm:$0xff]   ;;  %v3001_v20 = vld [vmem:[#allocation5 + $0x68] sm:$0xff]   ;;  %v3517_v35 = vsub.s32 %v130_v29, %v132_v30  ;;  %p3340_p0 = scmp.ne.s32.totalorder %s2462_s13, %s3339_s0  ;;  %p3345_p2 = scmp.lt.s32.totalorder %s3339_s0, %s3339_s0 }
  0x85   :  { %v2995_v14 = vld [vmem:[#allocation5 + $0x18] sm:$0xff]   ;;  %v2999_v18 = vld [vmem:[#allocation5 + $0x20] sm:$0xff]   ;;  %v3002_v21 = vld [vmem:[#allocation5 + $0xe8] sm:$0xff]  }
  0x86   :  { %2679 = vmatpush3.bf16.msra.mxu0 %v2987_v6  ;;  %v2996_v15 = vld [vmem:[#allocation5 + $0x98] sm:$0xff]   ;;  %v3000_v19 = vld [vmem:[#allocation5 + $0xa0] sm:$0xff]   ;;  %v3003_v25 = vld [vmem:[#allocation5 + $0x28] sm:$0xff]   ;;  %p3346_p3 = por %p3345_p2, %p3344_p1 }
  0x87   :  { %2701 = vmatpush3.bf16.msra.mxu1 %v2988_v7  ;;  %2680 = vmatprep.subr.bf16.mxu0 %v2989_v8  ;;  %v3004_v26 = vld [vmem:[#allocation5 + $0xa8] sm:$0xff]   ;;  %v3005_v27 = vld [vmem:[#allocation5 + $0x70] sm:$0xff]   ;;  %v3009_v33 = vld [vmem:[#allocation5 + $0x78] sm:$0xff]  }
  0x88   :  { %2702 = vmatprep.subr.bf16.mxu1 %v2990_v9  ;;  %v3006_v28 = vld [vmem:[#allocation5 + $0xf0] sm:$0xff]   ;;  %v3010_v34 = vld [vmem:[#allocation5 + $0xf8] sm:$0xff]   ;;  %v3014_v41 = vld [vmem:[#allocation5 + $0x140] sm:$0xff]   ;;  %p3347_p4 = pnand %p3346_p3, %p3340_p0 }
  0x89   :  { %v3007_v31 = vld [vmem:[#allocation5 + $0x30] sm:$0xff]   ;;  %v3011_v36 = vld [vmem:[#allocation5 + $0x38] sm:$0xff]   ;;  %v3015_v42 = vld [vmem:[#allocation5 + $0x1c0] sm:$0xff]  }
  0x8a   :  { %2681 = vmatpush3.bf16.msra.mxu0 %v2991_v10  ;;  %v3008_v32 = vld [vmem:[#allocation5 + $0xb0] sm:$0xff]   ;;  %v3012_v37 = vld [vmem:[#allocation5 + $0xb8] sm:$0xff]   ;;  %v3016_v46 = vld [vmem:[#allocation5 + $0x100] sm:$0xff]  }
  0x8b   :  { %2703 = vmatpush3.bf16.msra.mxu1 %v2992_v11  ;;  %2682 = vmatprep.subr.bf16.mxu0 %v2993_v12  ;;  %v115_v38 = vld [vmem:[#allocation2] sm:$0xff]  ;;  %v3017_v49 = vld [vmem:[#allocation5 + $0x180] sm:$0xff]   ;;  %v3018_v51 = vld [vmem:[#allocation5 + $0x148] sm:$0xff]  }
  0x8c   :  { %2704 = vmatprep.subr.bf16.mxu1 %v2994_v13  ;;  %v134_v39 = vrot.slane %v115_v38, %v3517_v35  ;;  %v127_v40 = vcombine.high %v115_v38, %v115_v38  ;;  %v3019_v53 = vld [vmem:[#allocation5 + $0x1c8] sm:$0xff]   ;;  %v3022_v56 = vld [vmem:[#allocation5 + $0x150] sm:$0xff]   ;;  %v3026_v60 = vld [vmem:[#allocation5 + $0x158] sm:$0xff]  }
  0x8d   :  { %v3020_v54 = vld [vmem:[#allocation5 + $0x108] sm:$0xff]   ;;  %v3023_v57 = vld [vmem:[#allocation5 + $0x1d0] sm:$0xff]   ;;  %v3027_v61 = vld [vmem:[#allocation5 + $0x1d8] sm:$0xff]  }
  0x8e   :  { %2683 = vmatpush3.bf16.msra.mxu0 %v2995_v14  ;;  %v142_v43 = vcombine.high %v134_v39, %v134_v39  ;;  %v141_v44 = vrot.slane %v127_v40, %v3517_v35  ;;  %v253_v45 = vpack.c.bf16 %v134_v39, %v134_v39  ;;  %v3021_v55 = vld [vmem:[#allocation5 + $0x188] sm:$0xff]   ;;  %v3024_v58 = vld [vmem:[#allocation5 + $0x110] sm:$0xff]   ;;  %v3028_v62 = vld [vmem:[#allocation5 + $0x118] sm:$0xff]  }
  0x8f   :  { %2705 = vmatpush3.bf16.msra.mxu1 %v2996_v15  ;;  %2684 = vmatprep.subr.bf16.mxu0 %v2997_v16  ;;  %v3025_v59 = vld [vmem:[#allocation5 + $0x190] sm:$0xff]   ;;  %v3029_v63 = vld [vmem:[#allocation5 + $0x198] sm:$0xff]   ;;  %v3030_v0 = vld [vmem:[#allocation5 + $0x160] sm:$0xff]  }
  0x90   :  { %2706 = vmatprep.subr.bf16.mxu1 %v2998_v17  ;;  %v254_v47 = vpack.c.bf16 %v142_v43, %v142_v43  ;;  %v143_v48 = vcombine.high %v141_v44, %v141_v44  ;;  %v255_v50 = vpack.c.bf16 %v141_v44, %v141_v44  ;;  %v3031_v1 = vld [vmem:[#allocation5 + $0x1e0] sm:$0xff]   ;;  %v3034_v4 = vld [vmem:[#allocation5 + $0x168] sm:$0xff]   ;;  %v3038_v8 = vld [vmem:[#allocation5 + $0x170] sm:$0xff]  }
  0x91   :  { %v3032_v2 = vld [vmem:[#allocation5 + $0x120] sm:$0xff]   ;;  %v3035_v5 = vld [vmem:[#allocation5 + $0x1e8] sm:$0xff]   ;;  %v3039_v9 = vld [vmem:[#allocation5 + $0x1f0] sm:$0xff]  }
  0x92   :  { %2685 = vmatpush3.bf16.msra.mxu0 %v2999_v18  ;;  %1852 = vmatprep.mubr.bf16.mxu0 %v254_v47  ;;  %v256_v52 = vpack.c.bf16 %v143_v48, %v143_v48  ;;  %v3033_v3 = vld [vmem:[#allocation5 + $0x1a0] sm:$0xff]   ;;  %v3036_v6 = vld [vmem:[#allocation5 + $0x128] sm:$0xff]   ;;  %v3040_v10 = vld [vmem:[#allocation5 + $0x130] sm:$0xff]  }
  0x93   :  { %2707 = vmatpush3.bf16.msra.mxu1 %v3000_v19  ;;  %2686 = vmatprep.subr.bf16.mxu0 %v3001_v20  ;;  %v3037_v7 = vld [vmem:[#allocation5 + $0x1a8] sm:$0xff]   ;;  %v3041_v11 = vld [vmem:[#allocation5 + $0x1b0] sm:$0xff]   ;;  %v3042_v12 = vld [vmem:[#allocation5 + $0x178] sm:$0xff]  }
  0x94   :  { %2708 = vmatprep.subr.bf16.mxu1 %v3002_v21  ;;  %1892 = vmatprep.mubr.bf16.mxu1 %v256_v52  ;;  %v3043_v13 = vld [vmem:[#allocation5 + $0x1f8] sm:$0xff]   ;;  %v3047_v19 = vld [vmem:[#allocation5 + $0x240] sm:$0xff]   ;;  %v3051_v29 = vld [vmem:[#allocation5 + $0x248] sm:$0xff]  }
  0x95   :  { %v3044_v14 = vld [vmem:[#allocation5 + $0x138] sm:$0xff]   ;;  %v3048_v22 = vld [vmem:[#allocation5 + $0x2c0] sm:$0xff]   ;;  %v3058_v38 = vld [vmem:[#allocation5 + $0x290] sm:$0xff]  }
  0x96   :  { %2687 = vmatpush3.bf16.msra.mxu0 %v3003_v25  ;;  %v116_v15 = vld [vmem:[#allocation2 + $0x8] sm:$0xff]  ;;  %v3049_v24 = vld [vmem:[#allocation5 + $0x200] sm:$0xff]   ;;  %v3067_v47 = vld [vmem:[#allocation5 + $0x268] sm:$0xff]  }
  0x97   :  { %2709 = vmatpush3.bf16.msra.mxu1 %v3004_v26  ;;  %2688 = vmatprep.subr.bf16.mxu0 %v3005_v27  ;;  %v3045_v16 = vld [vmem:[#allocation5 + $0x1b8] sm:$0xff]   ;;  %v151_v17 = vrot.slane %v116_v15, %v3517_v35  ;;  %v144_v18 = vcombine.high %v116_v15, %v116_v15  ;;  %v3050_v27 = vld [vmem:[#allocation5 + $0x280] sm:$0xff]   ;;  %v3068_v48 = vld [vmem:[#allocation5 + $0x2e8] sm:$0xff]  }
  0x98   :  { %2710 = vmatprep.subr.bf16.mxu1 %v3006_v28  ;;  %v3059_v39 = vld [vmem:[#allocation5 + $0x258] sm:$0xff]   ;;  %v3063_v43 = vld [vmem:[#allocation5 + $0x260] sm:$0xff]   ;;  %v3072_v52 = vld [vmem:[#allocation5 + $0x2f0] sm:$0xff]  }
  0x99   :  { %v159_v20 = vcombine.high %v151_v17, %v151_v17  ;;  %v158_v21 = vrot.slane %v144_v18, %v3517_v35  ;;  %v257_v23 = vpack.c.bf16 %v151_v17, %v151_v17  ;;  %v3060_v40 = vld [vmem:[#allocation5 + $0x2d8] sm:$0xff]   ;;  %v3064_v44 = vld [vmem:[#allocation5 + $0x2e0] sm:$0xff]   ;;  %v3090_v15 = vld [vmem:[#allocation5 + $0x310] sm:$0xff]  }
  0x9a   :  { %2689 = vmatpush3.bf16.msra.mxu0 %v3007_v31  ;;  %v3052_v31 = vld [vmem:[#allocation5 + $0x2c8] sm:$0xff]   ;;  %v3092_v17 = vld [vmem:[#allocation5 + $0x358] sm:$0xff]  }
  0x9b   :  { %2711 = vmatpush3.bf16.msra.mxu1 %v3008_v32  ;;  %2690 = vmatprep.subr.bf16.mxu0 %v3009_v33  ;;  %v258_v25 = vpack.c.bf16 %v159_v20, %v159_v20  ;;  %v160_v26 = vcombine.high %v158_v21, %v158_v21  ;;  %v259_v28 = vpack.c.bf16 %v158_v21, %v158_v21  ;;  %v3053_v32 = vld [vmem:[#allocation5 + $0x208] sm:$0xff]   ;;  %v3093_v18 = vld [vmem:[#allocation5 + $0x3d8] sm:$0xff]   ;;  %v3096_v21 = vld [vmem:[#allocation5 + $0x360] sm:$0xff]  }
  0x9c   :  { %2712 = vmatprep.subr.bf16.mxu1 %v3010_v34  ;;  %v3054_v33 = vld [vmem:[#allocation5 + $0x288] sm:$0xff]   ;;  %v3055_v34 = vld [vmem:[#allocation5 + $0x250] sm:$0xff]   ;;  %v3095_v20 = vld [vmem:[#allocation5 + $0x398] sm:$0xff]  }
  0x9d   :  { %v260_v30 = vpack.c.bf16 %v160_v26, %v160_v26  ;;  %v3101_v26 = vld [vmem:[#allocation5 + $0x3e8] sm:$0xff]  }
  0x9e   :  { %2691 = vmatpush3.bf16.msra.mxu0 %v3011_v36  ;;  %v3056_v36 = vld [vmem:[#allocation5 + $0x2d0] sm:$0xff]  }
  0x9f   :  { %2713 = vmatpush3.bf16.msra.mxu1 %v3012_v37  ;;  %2720 = vmatprep.subr.bf16.mxu0 %v3014_v41  ;;  %v3057_v37 = vld [vmem:[#allocation5 + $0x210] sm:$0xff]   ;;  %v3061_v41 = vld [vmem:[#allocation5 + $0x218] sm:$0xff]  }
  0xa0   :  { %2742 = vmatprep.subr.bf16.mxu1 %v3015_v42  ;;  %v3062_v42 = vld [vmem:[#allocation5 + $0x298] sm:$0xff]  }
  0xa1   :  { %1853 = vmatmul.mubr.bf16.vlgmr.msra.gmra.mrb[0].mxu0 %v253_v45  ;;  %v3065_v45 = vld [vmem:[#allocation5 + $0x220] sm:$0xff]  }
  0xa2   :  { %2721 = vmatpush3.bf16.msra.mxu0 %v3016_v46  ;;  %1893 = vmatmul.mubr.bf16.vlgmr.msra.gmra.mrb[0].mxu1 %v255_v50  ;;  %v3066_v46 = vld [vmem:[#allocation5 + $0x2a0] sm:$0xff]   ;;  %v3070_v50 = vld [vmem:[#allocation5 + $0x2a8] sm:$0xff]  }
  0xa3   :  { %2722 = vmatprep.subr.bf16.mxu0 %v3018_v51  ;;  %2743 = vmatpush3.bf16.msra.mxu1 %v3017_v49  ;;  %v3069_v49 = vld [vmem:[#allocation5 + $0x228] sm:$0xff]   ;;  %v3071_v51 = vld [vmem:[#allocation5 + $0x270] sm:$0xff]  }
  0xa4   :  { %2744 = vmatprep.subr.bf16.mxu1 %v3019_v53  ;;  %1932 = vmatprep.mubr.bf16.mxu0 %v258_v25  ;;  %v3073_v53 = vld [vmem:[#allocation5 + $0x230] sm:$0xff]   ;;  %v3100_v25 = vld [vmem:[#allocation5 + $0x368] sm:$0xff]  }
  0xa5   :  { %1972 = vmatprep.mubr.bf16.mxu1 %v260_v30  ;;  %v3105_v30 = vld [vmem:[#allocation5 + $0x3f0] sm:$0xff]  }
  0xa6   :  { %2723 = vmatpush3.bf16.msra.mxu0 %v3020_v54  ;;  %v3074_v54 = vld [vmem:[#allocation5 + $0x2b0] sm:$0xff]  }
  0xa7   :  { %2724 = vmatprep.subr.bf16.mxu0 %v3022_v56  ;;  %2745 = vmatpush3.bf16.msra.mxu1 %v3021_v55  ;;  %v3075_v55 = vld [vmem:[#allocation5 + $0x278] sm:$0xff]  }
  0xa8   :  { %2746 = vmatprep.subr.bf16.mxu1 %v3023_v57  ;;  %v3076_v56 = vld [vmem:[#allocation5 + $0x2f8] sm:$0xff]  }
  0xa9   :  { %v3077_v57 = vld [vmem:[#allocation5 + $0x238] sm:$0xff]  }
  0xaa   :  { %2725 = vmatpush3.bf16.msra.mxu0 %v3024_v58  ;;  %v117_v58 = vld [vmem:[#allocation2 + $0x10] sm:$0xff] }
  0xab   :  { %2726 = vmatprep.subr.bf16.mxu0 %v3026_v60  ;;  %2747 = vmatpush3.bf16.msra.mxu1 %v3025_v59  ;;  %v3078_v59 = vld [vmem:[#allocation5 + $0x2b8] sm:$0xff]   ;;  %v168_v60 = vrot.slane %v117_v58, %v3517_v35 }
  0xac   :  { %2748 = vmatprep.subr.bf16.mxu1 %v3027_v61  ;;  %v161_v61 = vcombine.high %v117_v58, %v117_v58  ;;  %v3123_v58 = vld [vmem:[#allocation5 + $0x410] sm:$0xff]  }
  0xae   :  { %2727 = vmatpush3.bf16.msra.mxu0 %v3028_v62  ;;  %v3080_v62 = vld [vmem:[#allocation5 + $0x340] sm:$0xff]  }
  0xaf   :  { %2728 = vmatprep.subr.bf16.mxu0 %v3030_v0  ;;  %2749 = vmatpush3.bf16.msra.mxu1 %v3029_v63  ;;  %v176_v63 = vcombine.high %v168_v60, %v168_v60  ;;  %v175_v0 = vrot.slane %v161_v61, %v3517_v35  ;;  %v3126_v61 = vld [vmem:[#allocation5 + $0x4d8] sm:$0xff]  }
  0xb0   :  { %2750 = vmatprep.subr.bf16.mxu1 %v3031_v1  ;;  %v3081_v1 = vld [vmem:[#allocation5 + $0x3c0] sm:$0xff]  }
  0xb2   :  { %2729 = vmatpush3.bf16.msra.mxu0 %v3032_v2  ;;  %v261_v2 = vpack.c.bf16 %v168_v60, %v168_v60  ;;  %v3125_v60 = vld [vmem:[#allocation5 + $0x458] sm:$0xff]  }
  0xb3   :  { %2730 = vmatprep.subr.bf16.mxu0 %v3034_v4  ;;  %2751 = vmatpush3.bf16.msra.mxu1 %v3033_v3  ;;  %v3082_v3 = vld [vmem:[#allocation5 + $0x300] sm:$0xff]   ;;  %v262_v4 = vpack.c.bf16 %v176_v63, %v176_v63  ;;  %v3128_v63 = vld [vmem:[#allocation5 + $0x498] sm:$0xff]  }
  0xb4   :  { %2752 = vmatprep.subr.bf16.mxu1 %v3035_v5  ;;  %v177_v5 = vcombine.high %v175_v0, %v175_v0 }
  0xb6   :  { %2731 = vmatpush3.bf16.msra.mxu0 %v3036_v6  ;;  %v3083_v6 = vld [vmem:[#allocation5 + $0x380] sm:$0xff]  }
  0xb7   :  { %2732 = vmatprep.subr.bf16.mxu0 %v3038_v8  ;;  %2753 = vmatpush3.bf16.msra.mxu1 %v3037_v7  ;;  %v263_v7 = vpack.c.bf16 %v175_v0, %v175_v0  ;;  %v3084_v8 = vld [vmem:[#allocation5 + $0x348] sm:$0xff]   ;;  %v3129_v0 = vld [vmem:[#allocation5 + $0x460] sm:$0xff]  }
  0xb8   :  { %2754 = vmatprep.subr.bf16.mxu1 %v3039_v9  ;;  %v264_v9 = vpack.c.bf16 %v177_v5, %v177_v5  ;;  %v3134_v5 = vld [vmem:[#allocation5 + $0x4e8] sm:$0xff]  }
  0xba   :  { %2733 = vmatpush3.bf16.msra.mxu0 %v3040_v10  ;;  %v3085_v10 = vld [vmem:[#allocation5 + $0x3c8] sm:$0xff]  }
  0xbb   :  { %2734 = vmatprep.subr.bf16.mxu0 %v3042_v12  ;;  %2755 = vmatpush3.bf16.msra.mxu1 %v3041_v11  ;;  %v3086_v11 = vld [vmem:[#allocation5 + $0x308] sm:$0xff]  }
  0xbc   :  { %2756 = vmatprep.subr.bf16.mxu1 %v3043_v13  ;;  %v3087_v12 = vld [vmem:[#allocation5 + $0x388] sm:$0xff]   ;;  %v3088_v13 = vld [vmem:[#allocation5 + $0x350] sm:$0xff]  }
  0xbe   :  { %2735 = vmatpush3.bf16.msra.mxu0 %v3044_v14  ;;  %v3089_v14 = vld [vmem:[#allocation5 + $0x3d0] sm:$0xff]  }
  0xbf   :  { %2764 = vmatprep.subr.bf16.mxu0 %v3047_v19  ;;  %2757 = vmatpush3.bf16.msra.mxu1 %v3045_v16  ;;  %v3091_v16 = vld [vmem:[#allocation5 + $0x390] sm:$0xff]   ;;  %v3094_v19 = vld [vmem:[#allocation5 + $0x318] sm:$0xff]  }
  0xc0   :  { %2786 = vmatprep.subr.bf16.mxu1 %v3048_v22  ;;  %v3097_v22 = vld [vmem:[#allocation5 + $0x3e0] sm:$0xff]  }
  0xc1   :  { %1933 = vmatmul.mubr.bf16.vlgmr.msra.gmra.mrb[4].mxu0 %v257_v23  ;;  %v3098_v23 = vld [vmem:[#allocation5 + $0x320] sm:$0xff]  }
  0xc2   :  { %2765 = vmatpush3.bf16.msra.mxu0 %v3049_v24  ;;  %1973 = vmatmul.mubr.bf16.vlgmr.msra.gmra.mrb[4].mxu1 %v259_v28  ;;  %v3099_v24 = vld [vmem:[#allocation5 + $0x3a0] sm:$0xff]   ;;  %v3103_v28 = vld [vmem:[#allocation5 + $0x3a8] sm:$0xff]  }
  0xc3   :  { %2766 = vmatprep.subr.bf16.mxu0 %v3051_v29  ;;  %2787 = vmatpush3.bf16.msra.mxu1 %v3050_v27  ;;  %v3102_v27 = vld [vmem:[#allocation5 + $0x328] sm:$0xff]   ;;  %v3104_v29 = vld [vmem:[#allocation5 + $0x370] sm:$0xff]  }
  0xc4   :  { %2788 = vmatprep.subr.bf16.mxu1 %v3052_v31  ;;  %2012 = vmatprep.mubr.bf16.mxu0 %v262_v4  ;;  %v3106_v31 = vld [vmem:[#allocation5 + $0x330] sm:$0xff]   ;;  %v3133_v4 = vld [vmem:[#allocation5 + $0x468] sm:$0xff]  }
  0xc5   :  { %2052 = vmatprep.mubr.bf16.mxu1 %v264_v9  ;;  %v3138_v9 = vld [vmem:[#allocation5 + $0x4f0] sm:$0xff]  }
  0xc6   :  { %2767 = vmatpush3.bf16.msra.mxu0 %v3053_v32  ;;  %v3107_v32 = vld [vmem:[#allocation5 + $0x3b0] sm:$0xff]  }
  0xc7   :  { %2768 = vmatprep.subr.bf16.mxu0 %v3055_v34  ;;  %2789 = vmatpush3.bf16.msra.mxu1 %v3054_v33  ;;  %v3108_v33 = vld [vmem:[#allocation5 + $0x378] sm:$0xff]  }
  0xc8   :  { %2790 = vmatprep.subr.bf16.mxu1 %v3056_v36  ;;  %v3109_v34 = vld [vmem:[#allocation5 + $0x3f8] sm:$0xff]  }
  0xc9   :  { %v3110_v36 = vld [vmem:[#allocation5 + $0x338] sm:$0xff]  }
  0xca   :  { %2769 = vmatpush3.bf16.msra.mxu0 %v3057_v37  ;;  %v118_v37 = vld [vmem:[#allocation2 + $0x18] sm:$0xff] }
  0xcb   :  { %2770 = vmatprep.subr.bf16.mxu0 %v3059_v39  ;;  %2791 = vmatpush3.bf16.msra.mxu1 %v3058_v38  ;;  %v185_v38 = vrot.slane %v118_v37, %v3517_v35  ;;  %v178_v39 = vcombine.high %v118_v37, %v118_v37  ;;  %v3156_v37 = vld [vmem:[#allocation5 + $0x510] sm:$0xff]  }
  0xcc   :  { %2792 = vmatprep.subr.bf16.mxu1 %v3060_v40  ;;  %v3113_v40 = vld [vmem:[#allocation5 + $0x440] sm:$0xff]  }
  0xce   :  { %2771 = vmatpush3.bf16.msra.mxu0 %v3061_v41  ;;  %v3111_v41 = vld [vmem:[#allocation5 + $0x3b8] sm:$0xff]  }
  0xcf   :  { %2772 = vmatprep.subr.bf16.mxu0 %v3063_v43  ;;  %2793 = vmatpush3.bf16.msra.mxu1 %v3062_v42  ;;  %v193_v42 = vcombine.high %v185_v38, %v185_v38  ;;  %v192_v43 = vrot.slane %v178_v39, %v3517_v35  ;;  %v3158_v39 = vld [vmem:[#allocation5 + $0x558] sm:$0xff]  }
  0xd0   :  { %2794 = vmatprep.subr.bf16.mxu1 %v3064_v44  ;;  %v3114_v44 = vld [vmem:[#allocation5 + $0x4c0] sm:$0xff]  }
  0xd2   :  { %2773 = vmatpush3.bf16.msra.mxu0 %v3065_v45  ;;  %v265_v45 = vpack.c.bf16 %v185_v38, %v185_v38  ;;  %v3157_v38 = vld [vmem:[#allocation5 + $0x590] sm:$0xff]  }
  0xd3   :  { %2774 = vmatprep.subr.bf16.mxu0 %v3067_v47  ;;  %2795 = vmatpush3.bf16.msra.mxu1 %v3066_v46  ;;  %v3115_v46 = vld [vmem:[#allocation5 + $0x400] sm:$0xff]   ;;  %v266_v47 = vpack.c.bf16 %v193_v42, %v193_v42  ;;  %v3161_v42 = vld [vmem:[#allocation5 + $0x598] sm:$0xff]  }
  0xd4   :  { %2796 = vmatprep.subr.bf16.mxu1 %v3068_v48  ;;  %v194_v48 = vcombine.high %v192_v43, %v192_v43 }
  0xd6   :  { %2775 = vmatpush3.bf16.msra.mxu0 %v3069_v49  ;;  %v3116_v49 = vld [vmem:[#allocation5 + $0x480] sm:$0xff]  }
  0xd7   :  { %2776 = vmatprep.subr.bf16.mxu0 %v3071_v51  ;;  %2797 = vmatpush3.bf16.msra.mxu1 %v3070_v50  ;;  %v267_v50 = vpack.c.bf16 %v192_v43, %v192_v43  ;;  %v3117_v51 = vld [vmem:[#allocation5 + $0x448] sm:$0xff]   ;;  %v3162_v43 = vld [vmem:[#allocation5 + $0x560] sm:$0xff]  }
  0xd8   :  { %2798 = vmatprep.subr.bf16.mxu1 %v3072_v52  ;;  %v268_v52 = vpack.c.bf16 %v194_v48, %v194_v48  ;;  %v3167_v48 = vld [vmem:[#allocation5 + $0x5e8] sm:$0xff]  }
  0xda   :  { %2777 = vmatpush3.bf16.msra.mxu0 %v3073_v53  ;;  %v3118_v53 = vld [vmem:[#allocation5 + $0x4c8] sm:$0xff]  }
  0xdb   :  { %2778 = vmatprep.subr.bf16.mxu0 %v3075_v55  ;;  %2799 = vmatpush3.bf16.msra.mxu1 %v3074_v54  ;;  %v3119_v54 = vld [vmem:[#allocation5 + $0x408] sm:$0xff]  }
  0xdc   :  { %2800 = vmatprep.subr.bf16.mxu1 %v3076_v56  ;;  %v3120_v55 = vld [vmem:[#allocation5 + $0x488] sm:$0xff]   ;;  %v3121_v56 = vld [vmem:[#allocation5 + $0x450] sm:$0xff]  }
  0xde   :  { %2779 = vmatpush3.bf16.msra.mxu0 %v3077_v57  ;;  %v3122_v57 = vld [vmem:[#allocation5 + $0x4d0] sm:$0xff]  }
  0xdf   :  { %2808 = vmatprep.subr.bf16.mxu0 %v3080_v62  ;;  %2801 = vmatpush3.bf16.msra.mxu1 %v3078_v59  ;;  %v3124_v59 = vld [vmem:[#allocation5 + $0x490] sm:$0xff]   ;;  %v3127_v62 = vld [vmem:[#allocation5 + $0x418] sm:$0xff]  }
  0xe0   :  { %2830 = vmatprep.subr.bf16.mxu1 %v3081_v1  ;;  %v3130_v1 = vld [vmem:[#allocation5 + $0x4e0] sm:$0xff]  }
  0xe1   :  { %2013 = vmatmul.mubr.bf16.vlgmr.msra.gmra.mrb[8].mxu0 %v261_v2  ;;  %v3131_v2 = vld [vmem:[#allocation5 + $0x420] sm:$0xff]  }
  0xe2   :  { %2809 = vmatpush3.bf16.msra.mxu0 %v3082_v3  ;;  %2053 = vmatmul.mubr.bf16.vlgmr.msra.gmra.mrb[8].mxu1 %v263_v7  ;;  %v3132_v3 = vld [vmem:[#allocation5 + $0x4a0] sm:$0xff]   ;;  %v3136_v7 = vld [vmem:[#allocation5 + $0x4a8] sm:$0xff]  }
  0xe3   :  { %2810 = vmatprep.subr.bf16.mxu0 %v3084_v8  ;;  %2831 = vmatpush3.bf16.msra.mxu1 %v3083_v6  ;;  %v3135_v6 = vld [vmem:[#allocation5 + $0x428] sm:$0xff]   ;;  %v3137_v8 = vld [vmem:[#allocation5 + $0x470] sm:$0xff]  }
  0xe4   :  { %2832 = vmatprep.subr.bf16.mxu1 %v3085_v10  ;;  %2092 = vmatprep.mubr.bf16.mxu0 %v266_v47  ;;  %v3139_v10 = vld [vmem:[#allocation5 + $0x430] sm:$0xff]   ;;  %v3166_v47 = vld [vmem:[#allocation5 + $0x568] sm:$0xff]  }
  0xe5   :  { %2132 = vmatprep.mubr.bf16.mxu1 %v268_v52  ;;  %v3171_v52 = vld [vmem:[#allocation5 + $0x5f0] sm:$0xff]  }
  0xe6   :  { %2811 = vmatpush3.bf16.msra.mxu0 %v3086_v11  ;;  %v3140_v11 = vld [vmem:[#allocation5 + $0x4b0] sm:$0xff]  }
  0xe7   :  { %2812 = vmatprep.subr.bf16.mxu0 %v3088_v13  ;;  %2833 = vmatpush3.bf16.msra.mxu1 %v3087_v12  ;;  %v3141_v12 = vld [vmem:[#allocation5 + $0x478] sm:$0xff]  }
  0xe8   :  { %2834 = vmatprep.subr.bf16.mxu1 %v3089_v14  ;;  %v3142_v13 = vld [vmem:[#allocation5 + $0x4f8] sm:$0xff]  }
  0xe9   :  { %v3143_v14 = vld [vmem:[#allocation5 + $0x438] sm:$0xff]  }
  0xea   :  { %2813 = vmatpush3.bf16.msra.mxu0 %v3090_v15  ;;  %v119_v15 = vld [vmem:[#allocation2 + $0x20] sm:$0xff] }
  0xeb   :  { %2814 = vmatprep.subr.bf16.mxu0 %v3092_v17  ;;  %2835 = vmatpush3.bf16.msra.mxu1 %v3091_v16  ;;  %v3144_v16 = vld [vmem:[#allocation5 + $0x4b8] sm:$0xff]   ;;  %v202_v17 = vrot.slane %v119_v15, %v3517_v35 }
  0xec   :  { %2836 = vmatprep.subr.bf16.mxu1 %v3093_v18  ;;  %v195_v18 = vcombine.high %v119_v15, %v119_v15 }
  0xee   :  { %2815 = vmatpush3.bf16.msra.mxu0 %v3094_v19  ;;  %v3146_v19 = vld [vmem:[#allocation5 + $0x540] sm:$0xff]  }
  0xef   :  { %2816 = vmatprep.subr.bf16.mxu0 %v3096_v21  ;;  %2837 = vmatpush3.bf16.msra.mxu1 %v3095_v20  ;;  %v210_v20 = vcombine.high %v202_v17, %v202_v17  ;;  %v209_v21 = vrot.slane %v195_v18, %v3517_v35  ;;  %v3381_v18 = vmov 0.0  }
  0xf0   :  { %2838 = vmatprep.subr.bf16.mxu1 %v3097_v22  ;;  %v3147_v22 = vld [vmem:[#allocation5 + $0x5c0] sm:$0xff]  }
  0xf2   :  { %2817 = vmatpush3.bf16.msra.mxu0 %v3098_v23  ;;  %v269_v23 = vpack.c.bf16 %v202_v17, %v202_v17  ;;  %v3179_v17 = vld [vmem:[#allocation8] sm:$0xff]  }
  0xf3   :  { %2818 = vmatprep.subr.bf16.mxu0 %v3100_v25  ;;  %2839 = vmatpush3.bf16.msra.mxu1 %v3099_v24  ;;  %v3148_v24 = vld [vmem:[#allocation5 + $0x500] sm:$0xff]   ;;  %v270_v25 = vpack.c.bf16 %v210_v20, %v210_v20 }
  0xf4   :  { %2840 = vmatprep.subr.bf16.mxu1 %v3101_v26  ;;  %v211_v26 = vcombine.high %v209_v21, %v209_v21 }
  0xf6   :  { %2819 = vmatpush3.bf16.msra.mxu0 %v3102_v27  ;;  %v3149_v27 = vld [vmem:[#allocation5 + $0x580] sm:$0xff]  }
  0xf7   :  { %2820 = vmatprep.subr.bf16.mxu0 %v3104_v29  ;;  %2841 = vmatpush3.bf16.msra.mxu1 %v3103_v28  ;;  %v271_v28 = vpack.c.bf16 %v209_v21, %v209_v21  ;;  %v3150_v29 = vld [vmem:[#allocation5 + $0x548] sm:$0xff]  }
  0xf8   :  { %2842 = vmatprep.subr.bf16.mxu1 %v3105_v30  ;;  %v272_v30 = vpack.c.bf16 %v211_v26, %v211_v26 }
  0xfa   :  { %2821 = vmatpush3.bf16.msra.mxu0 %v3106_v31  ;;  %v3151_v31 = vld [vmem:[#allocation5 + $0x5c8] sm:$0xff]  }
  0xfb   :  { %2822 = vmatprep.subr.bf16.mxu0 %v3108_v33  ;;  %2843 = vmatpush3.bf16.msra.mxu1 %v3107_v32  ;;  %v3152_v32 = vld [vmem:[#allocation5 + $0x508] sm:$0xff]  }
  0xfc   :  { %2844 = vmatprep.subr.bf16.mxu1 %v3109_v34  ;;  %v3153_v33 = vld [vmem:[#allocation5 + $0x588] sm:$0xff]   ;;  %v3154_v34 = vld [vmem:[#allocation5 + $0x550] sm:$0xff]  }
  0xfe   :  { %2823 = vmatpush3.bf16.msra.mxu0 %v3110_v36  ;;  %v3155_v36 = vld [vmem:[#allocation5 + $0x5d0] sm:$0xff]  }
  0xff   :  { %2852 = vmatprep.subr.bf16.mxu0 %v3113_v40  ;;  %2845 = vmatpush3.bf16.msra.mxu1 %v3111_v41  ;;  %v3159_v40 = vld [vmem:[#allocation5 + $0x5d8] sm:$0xff]  }
 0x100   :  { %2874 = vmatprep.subr.bf16.mxu1 %v3114_v44  ;;  %v3160_v41 = vld [vmem:[#allocation5 + $0x518] sm:$0xff]   ;;  %v3163_v44 = vld [vmem:[#allocation5 + $0x5e0] sm:$0xff]  }
 0x101   :  { %2093 = vmatmul.mubr.bf16.vlgmr.msra.gmra.mrb[12].mxu0 %v265_v45  ;;  %v3164_v45 = vld [vmem:[#allocation5 + $0x520] sm:$0xff]  }
 0x102   :  { %2853 = vmatpush3.bf16.msra.mxu0 %v3115_v46  ;;  %2133 = vmatmul.mubr.bf16.vlgmr.msra.gmra.mrb[12].mxu1 %v267_v50  ;;  %v3165_v46 = vld [vmem:[#allocation5 + $0x5a0] sm:$0xff]   ;;  %v3169_v50 = vld [vmem:[#allocation5 + $0x5a8] sm:$0xff]  }
 0x103   :  { %2854 = vmatprep.subr.bf16.mxu0 %v3117_v51  ;;  %2875 = vmatpush3.bf16.msra.mxu1 %v3116_v49  ;;  %v3168_v49 = vld [vmem:[#allocation5 + $0x528] sm:$0xff]   ;;  %v3170_v51 = vld [vmem:[#allocation5 + $0x570] sm:$0xff]  }
 0x104   :  { %2876 = vmatprep.subr.bf16.mxu1 %v3118_v53  ;;  %2172 = vmatprep.mubr.bf16.mxu0 %v270_v25  ;;  %v3172_v53 = vld [vmem:[#allocation5 + $0x530] sm:$0xff]  }
 0x105   :  { %2212 = vmatprep.mubr.bf16.mxu1 %v272_v30 }
 0x106   :  { %2855 = vmatpush3.bf16.msra.mxu0 %v3119_v54  ;;  %v3173_v54 = vld [vmem:[#allocation5 + $0x5b0] sm:$0xff]  }
 0x107   :  { %2856 = vmatprep.subr.bf16.mxu0 %v3121_v56  ;;  %2877 = vmatpush3.bf16.msra.mxu1 %v3120_v55  ;;  %v3174_v55 = vld [vmem:[#allocation5 + $0x578] sm:$0xff]  }
 0x108   :  { %2878 = vmatprep.subr.bf16.mxu1 %v3122_v57  ;;  %v3175_v56 = vld [vmem:[#allocation5 + $0x5f8] sm:$0xff]  }
 0x109   :  { %v3176_v57 = vld [vmem:[#allocation5 + $0x538] sm:$0xff]  }
 0x10a   :  { %2857 = vmatpush3.bf16.msra.mxu0 %v3123_v58  ;;  %v120_v58 = vld [vmem:[#allocation2 + $0x28] sm:$0xff] }
 0x10b   :  { %2858 = vmatprep.subr.bf16.mxu0 %v3125_v60  ;;  %2879 = vmatpush3.bf16.msra.mxu1 %v3124_v59  ;;  %v3177_v59 = vld [vmem:[#allocation5 + $0x5b8] sm:$0xff]   ;;  %v219_v60 = vrot.slane %v120_v58, %v3517_v35 }
 0x10c   :  { %2880 = vmatprep.subr.bf16.mxu1 %v3126_v61  ;;  %v212_v61 = vcombine.high %v120_v58, %v120_v58 }
 0x10e   :  { %2859 = vmatpush3.bf16.msra.mxu0 %v3127_v62  ;;  %v227_v62 = vcombine.high %v219_v60, %v219_v60 }
 0x10f   :  { %2860 = vmatprep.subr.bf16.mxu0 %v3129_v0  ;;  %2881 = vmatpush3.bf16.msra.mxu1 %v3128_v63  ;;  %v226_v63 = vrot.slane %v212_v61, %v3517_v35  ;;  %v273_v0 = vpack.c.bf16 %v219_v60, %v219_v60 }
 0x110   :  { %2882 = vmatprep.subr.bf16.mxu1 %v3130_v1  ;;  %v274_v1 = vpack.c.bf16 %v227_v62, %v227_v62 }
 0x112   :  { %2861 = vmatpush3.bf16.msra.mxu0 %v3131_v2  ;;  %v228_v2 = vcombine.high %v226_v63, %v226_v63 }
 0x113   :  { %2862 = vmatprep.subr.bf16.mxu0 %v3133_v4  ;;  %2883 = vmatpush3.bf16.msra.mxu1 %v3132_v3  ;;  %v275_v3 = vpack.c.bf16 %v226_v63, %v226_v63 }
 0x114   :  { %2884 = vmatprep.subr.bf16.mxu1 %v3134_v5  ;;  %v276_v4 = vpack.c.bf16 %v228_v2, %v228_v2 }
 0x116   :  { %2863 = vmatpush3.bf16.msra.mxu0 %v3135_v6  ;;  %v2473_v6 = vld [vmem:[#allocation7] ss:$0 sm:$0xff] }
 0x117   :  { %2864 = vmatprep.subr.bf16.mxu0 %v3137_v8  ;;  %2885 = vmatpush3.bf16.msra.mxu1 %v3136_v7 }
 0x118   :  { %2886 = vmatprep.subr.bf16.mxu1 %v3138_v9 }
 0x11a   :  { %2865 = vmatpush3.bf16.msra.mxu0 %v3139_v10 }
 0x11b   :  { %2866 = vmatprep.subr.bf16.mxu0 %v3141_v12  ;;  %2887 = vmatpush3.bf16.msra.mxu1 %v3140_v11 }
 0x11c   :  { %2888 = vmatprep.subr.bf16.mxu1 %v3142_v13 }
 0x11e   :  { %2867 = vmatpush3.bf16.msra.mxu0 %v3143_v14 }
 0x11f   :  { %2896 = vmatprep.subr.bf16.mxu0 %v3146_v19  ;;  %2889 = vmatpush3.bf16.msra.mxu1 %v3144_v16 }
 0x120   :  { %2918 = vmatprep.subr.bf16.mxu1 %v3147_v22 }
 0x121   :  { %2173 = vmatmul.mubr.bf16.vlgmr.msra.gmra.mrb[16].mxu0 %v269_v23 }
 0x122   :  { %2897 = vmatpush3.bf16.msra.mxu0 %v3148_v24  ;;  %2213 = vmatmul.mubr.bf16.vlgmr.msra.gmra.mrb[16].mxu1 %v271_v28  ;;  %v3180_v24 = vld [vmem:[#allocation8 + $0x8] sm:$0xff]  }
 0x123   :  { %2898 = vmatprep.subr.bf16.mxu0 %v3150_v29  ;;  %2919 = vmatpush3.bf16.msra.mxu1 %v3149_v27 }
 0x124   :  { %2920 = vmatprep.subr.bf16.mxu1 %v3151_v31  ;;  %2252 = vmatprep.mubr.bf16.mxu0 %v274_v1 }
 0x125   :  { %2292 = vmatprep.mubr.bf16.mxu1 %v276_v4 }
 0x126   :  { %2899 = vmatpush3.bf16.msra.mxu0 %v3152_v32  ;;  %v3181_v32 = vld [vmem:[#allocation8 + $0x10] sm:$0xff]  }
 0x127   :  { %2900 = vmatprep.subr.bf16.mxu0 %v3154_v34  ;;  %2921 = vmatpush3.bf16.msra.mxu1 %v3153_v33  ;;  %v3182_v33 = vld [vmem:[#allocation8 + $0x18] sm:$0xff]   ;;  %v3183_v34 = vld [vmem:[#allocation11] sm:$0xff]  }
 0x128   :  { %2922 = vmatprep.subr.bf16.mxu1 %v3155_v36 }
 0x12a   :  { %2901 = vmatpush3.bf16.msra.mxu0 %v3156_v37 }
 0x12b   :  { %2902 = vmatprep.subr.bf16.mxu0 %v3158_v39  ;;  %2923 = vmatpush3.bf16.msra.mxu1 %v3157_v38 }
 0x12c   :  { %2924 = vmatprep.subr.bf16.mxu1 %v3159_v40 }
 0x12e   :  { %2903 = vmatpush3.bf16.msra.mxu0 %v3160_v41 }
 0x12f   :  { %2904 = vmatprep.subr.bf16.mxu0 %v3162_v43  ;;  %2925 = vmatpush3.bf16.msra.mxu1 %v3161_v42 }
 0x130   :  { %2926 = vmatprep.subr.bf16.mxu1 %v3163_v44 }
 0x132   :  { %2905 = vmatpush3.bf16.msra.mxu0 %v3164_v45 }
 0x133   :  { %2906 = vmatprep.subr.bf16.mxu0 %v3166_v47  ;;  %2927 = vmatpush3.bf16.msra.mxu1 %v3165_v46 }
 0x134   :  { %2928 = vmatprep.subr.bf16.mxu1 %v3167_v48 }
 0x136   :  { %2907 = vmatpush3.bf16.msra.mxu0 %v3168_v49 }
 0x137   :  { %2908 = vmatprep.subr.bf16.mxu0 %v3170_v51  ;;  %2929 = vmatpush3.bf16.msra.mxu1 %v3169_v50 }
 0x138   :  { %2930 = vmatprep.subr.bf16.mxu1 %v3171_v52 }
 0x13a   :  { %2909 = vmatpush3.bf16.msra.mxu0 %v3172_v53 }
 0x13b   :  { %2910 = vmatprep.subr.bf16.mxu0 %v3174_v55  ;;  %2931 = vmatpush3.bf16.msra.mxu1 %v3173_v54 }
 0x13c   :  { %2932 = vmatprep.subr.bf16.mxu1 %v3175_v56 }
 0x13e   :  { %2911 = vmatpush3.bf16.msra.mxu0 %v3176_v57 }
 0x13f   :  { %2933 = vmatpush3.bf16.msra.mxu1 %v3177_v59  ;;  %2948 = vmatprep.subr.bf16.mxu0 %v3381_v18 }
 0x140   :  { %2960 = vmatprep.subr.bf16.mxu1 %v3381_v18 }
 0x141   :  { %2253 = vmatmul.mubr.bf16.vlgmr.msra.gmra.mrb[20].mxu0 %v273_v0 }
 0x142   :  { %2293 = vmatmul.mubr.bf16.vlgmr.msra.gmra.mrb[20].mxu1 %v275_v3  ;;  %2949 = vmatpush3.bf16.msra.mxu0 %v3179_v17 }
 0x143   :  { %2950 = vmatprep.subr.bf16.mxu0 %v3381_v18  ;;  %2956 = vmatprep.mubr.msk.bf16.mxu0 %vm3382_vm0, %v3381_v18 }
 0x144   :  { %2964 = vmatprep.mubr.msk.bf16.mxu1 %vm3382_vm0, %v3381_v18  ;;  %2961 = vmatpush3.bf16.msra.mxu1 %v3183_v34 }
 0x145   :  { %2962 = vmatprep.subr.bf16.mxu1 %v3381_v18 }
 0x146   :  { %2951 = vmatpush3.bf16.msra.mxu0 %v3180_v24 }
 0x147   :  { %2952 = vmatprep.subr.bf16.mxu0 %v3381_v18 }
 0x14a   :  { %2953 = vmatpush3.bf16.msra.mxu0 %v3181_v32 }
 0x14b   :  { %2954 = vmatprep.subr.bf16.mxu0 %v3381_v18 }
 0x14e   :  { %2955 = vmatpush3.bf16.msra.mxu0 %v3182_v33 }
 0x174   :  { %v2692_v5 = vpop.f32.mrb[0].mxu0 }
 0x175   :  { %v2693_v7 = vpop.f32.mrb[1].mxu0  ;;  %v2714_v8 = vpop.f32.mrb[0].mxu1 }
 0x176   :  { %v2694_v9 = vadd.f32 %v2693_v7, %v2692_v5  ;;  %v2695_v10 = vpop.f32.mrb[2].mxu0  ;;  %v2715_v11 = vpop.f32.mrb[1].mxu1 }
 0x177   :  { %v2696_v35 = vpop.f32.mrb[3].mxu0  ;;  %v2716_v13 = vadd.f32 %v2715_v11, %v2714_v8  ;;  %v2717_v14 = vpop.f32.mrb[2].mxu1 }
 0x178   :  { %v1855_v12 = vadd.f32 %v2694_v9, %v2473_v6  ;;  %v2718_v15 = vpop.f32.mrb[3].mxu1 }
 0x17a   :  { %v1895_v16 = vadd.f32 %v2716_v13, %v1855_v12 }
 0x194   :  { %v2736_v19 = vpop.f32.mrb[4].mxu0 }
 0x195   :  { %v2737_v20 = vpop.f32.mrb[5].mxu0  ;;  %v2758_v21 = vpop.f32.mrb[4].mxu1 }
 0x196   :  { %v2738_v22 = vadd.f32 %v2737_v20, %v2736_v19  ;;  %v2739_v23 = vpop.f32.mrb[6].mxu0  ;;  %v2759_v25 = vpop.f32.mrb[5].mxu1 }
 0x197   :  { %v2740_v26 = vpop.f32.mrb[7].mxu0  ;;  %v2760_v28 = vadd.f32 %v2759_v25, %v2758_v21  ;;  %v2761_v29 = vpop.f32.mrb[6].mxu1  ;;  %v3184_v21 = vld [vmem:[#allocation11 + $0x8] sm:$0xff]  }
 0x198   :  { %v1935_v27 = vadd.f32 %v2738_v22, %v1895_v16  ;;  %v2762_v30 = vpop.f32.mrb[7].mxu1  ;;  %2963 = vmatpush3.bf16.msra.mxu1 %v3184_v21  ;;  %v2666_v22 = vld [vmem:[#allocation10] ss:$0 sm:$0xff] }
 0x199   :  { %v2672_v30 = vld [vmem:[#allocation13] ss:$0 sm:$0xff] }
 0x19a   :  { %v1975_v31 = vadd.f32 %v2760_v28, %v1935_v27 }
 0x1b4   :  { %v2780_v36 = vpop.f32.mrb[8].mxu0 }
 0x1b5   :  { %v2781_v37 = vpop.f32.mrb[9].mxu0  ;;  %v2802_v38 = vpop.f32.mrb[8].mxu1 }
 0x1b6   :  { %v2782_v39 = vadd.f32 %v2781_v37, %v2780_v36  ;;  %v2783_v40 = vpop.f32.mrb[10].mxu0  ;;  %v2803_v41 = vpop.f32.mrb[9].mxu1 }
 0x1b7   :  { %v2784_v42 = vpop.f32.mrb[11].mxu0  ;;  %v2804_v44 = vadd.f32 %v2803_v41, %v2802_v38  ;;  %v2805_v45 = vpop.f32.mrb[10].mxu1 }
 0x1b8   :  { %v2015_v43 = vadd.f32 %v2782_v39, %v1975_v31  ;;  %v2806_v46 = vpop.f32.mrb[11].mxu1 }
 0x1ba   :  { %v2055_v47 = vadd.f32 %v2804_v44, %v2015_v43 }
 0x1d4   :  { %v2824_v48 = vpop.f32.mrb[12].mxu0 }
 0x1d5   :  { %v2825_v49 = vpop.f32.mrb[13].mxu0  ;;  %v2846_v50 = vpop.f32.mrb[12].mxu1 }
 0x1d6   :  { %v2826_v51 = vadd.f32 %v2825_v49, %v2824_v48  ;;  %v2827_v52 = vpop.f32.mrb[14].mxu0  ;;  %v2847_v53 = vpop.f32.mrb[13].mxu1 }
 0x1d7   :  { %v2828_v54 = vpop.f32.mrb[15].mxu0  ;;  %v2848_v56 = vadd.f32 %v2847_v53, %v2846_v50  ;;  %v2849_v57 = vpop.f32.mrb[14].mxu1 }
 0x1d8   :  { %v2095_v55 = vadd.f32 %v2826_v51, %v2055_v47  ;;  %v2850_v58 = vpop.f32.mrb[15].mxu1 }
 0x1da   :  { %v2135_v59 = vadd.f32 %v2848_v56, %v2095_v55 }
 0x1f4   :  { %v2868_v60 = vpop.f32.mrb[16].mxu0 }
 0x1f5   :  { %v2869_v61 = vpop.f32.mrb[17].mxu0  ;;  %v2890_v62 = vpop.f32.mrb[16].mxu1 }
 0x1f6   :  { %v2870_v63 = vadd.f32 %v2869_v61, %v2868_v60  ;;  %v2871_v0 = vpop.f32.mrb[18].mxu0  ;;  %v2891_v1 = vpop.f32.mrb[17].mxu1 }
 0x1f7   :  { %v2872_v2 = vpop.f32.mrb[19].mxu0  ;;  %v2892_v4 = vadd.f32 %v2891_v1, %v2890_v62  ;;  %v2893_v5 = vpop.f32.mrb[18].mxu1 }
 0x1f8   :  { %v2175_v3 = vadd.f32 %v2870_v63, %v2135_v59  ;;  %v2894_v6 = vpop.f32.mrb[19].mxu1 }
 0x1fa   :  { %v2215_v7 = vadd.f32 %v2892_v4, %v2175_v3 }
 0x214   :  { %v2912_v8 = vpop.f32.mrb[20].mxu0 }
 0x215   :  { %v2913_v9 = vpop.f32.mrb[21].mxu0  ;;  %v2934_v10 = vpop.f32.mrb[20].mxu1 }
 0x216   :  { %v2914_v11 = vadd.f32 %v2913_v9, %v2912_v8  ;;  %v2915_v35 = vpop.f32.mrb[22].mxu0  ;;  %v2935_v12 = vpop.f32.mrb[21].mxu1 }
 0x217   :  { %v2916_v13 = vpop.f32.mrb[23].mxu0  ;;  %v2936_v15 = vadd.f32 %v2935_v12, %v2934_v10  ;;  %v2937_v16 = vpop.f32.mrb[22].mxu1 }
 0x218   :  { %v2255_v14 = vadd.f32 %v2914_v11, %v2215_v7  ;;  %v2938_v17 = vpop.f32.mrb[23].mxu1 }
 0x21a   :  { %v2295_v18 = vadd.f32 %v2936_v15, %v2255_v14 }
 0x21c   :  { %v2300_v19 = vmax.f32 %v2295_v18, 0.0 }
 0x21e   :  { %v2301_v20 = vpack.c.bf16 %v2300_v19, %v2300_v19 }
 0x220   :  { %2957 = vmatmul.mubr.msk.bf16.vlgmr.msra.gmra.mrb[24].mxu0 %vm2341_vm1, %v2301_v20 }
 0x2f3   :  { %v2379_v23 = vpop.f32.mrb[24].mxu0 }
 0x2f4   :  { %v2380_v24 = vadd.f32 %v2666_v22, %v2379_v23  ;;  %v2958_v25 = vpop.f32.mrb[25].mxu0 }
 0x2f5   :  { %v2382_v26 = vpop.f32.mrb[26].mxu0 }
 0x2f6   :  { %v2385_v27 = vmax.f32 %v2380_v24, 0.0  ;;  %v2959_v28 = vpop.f32.mrb[27].mxu0 }
 0x2f8   :  { %v2386_v29 = vpack.c.bf16 %v2385_v27, %v2385_v27 }
 0x2fa   :  { %2965 = vmatmul.mubr.msk.bf16.vlgmr.msra.gmra.mrb[24].mxu1 %vm2410_vm2, %v2386_v29 }
 0x3cd   :  { %v2448_v31 = vpop.f32.mrb[24].mxu1 }
 0x3ce   :  { %v2449_v32 = vadd.f32 %v2672_v30, %v2448_v31  ;;  %v2966_v33 = vpop.f32.mrb[25].mxu1 }
 0x3cf   :  { %v2451_v34 = vpop.f32.mrb[26].mxu1 }
 0x3d0   :  { %2454 = vst [vmem:[#allocation14] sm:$0x3] %v2449_v32  ;;  %v2967_v36 = vpop.f32.mrb[27].mxu1 }
 0x3d1   :  { %3350 = shalt.err (!%p3347_p4)
}
 0x3d2   :  { %s3351_s15 = scalar_lea.hbm %s3550_s7, 32 }
 0x3d3   :  { %p3352_p5 = scmp.ne.s32.totalorder %s3550_s7, %s3351_s15  ;;  %p3355_p6 = scmp.lt.u32.totalorder %s3351_s15, %s3550_s7 }
 0x3d5   :  { %p3357_p7 = pnand %p3355_p6, %p3352_p5 }
 0x3d7   :  { %3360 = shalt.err (!%p3357_p7)
}
 0x3d8   :  { %2464 = dma.vmem_to_hbm [thread:$0]  %s2462_s13, 32, %s3550_s7, [#allocation4]  }
 0x3d9   :  { %3369 = dma.done.wait [#allocation4], 32  }
 0x3da   :  { %3370 = vsyncadd [#allocation4], 4294967264 }
 0x3db   :  { %2468 = vsyncpa [#allocation3], 1 }
 0x3dc   :  { %2469 = vsyncpa [#allocation6], 1 }
 0x3dd   :  { %2470 = vsyncpa [#allocation9], 1 }
 0x3de   :  { %2471 = vsyncpa [#allocation12], 1 }
 0x3df   :  { %2472 = vsyncpa [#allocation4], 1 }

</bundles_post_ra>
